<compile_context>
chip_gen: v6e
topology: v6e:2x2x1
jax: 0.10.0
libtpu: 0.0.40
codegen_flags: <defaults>
</compile_context>

<pallas_src>
import math

import jax
import jax.numpy as jnp
from jax.experimental import pallas as pl
from jax.experimental.pallas import tpu as pltpu


# ----------------------------------------------------------------------------
# elementwise helpers (VPU/EUP only)
# ----------------------------------------------------------------------------
def _erf_approx(x):
    # Abramowitz & Stegun 7.1.26 (matches torch erf-GELU to ~1e-6 level).
    a1, a2, a3, a4, a5 = (0.254829592, -0.284496736, 1.421413741,
                          -1.453152027, 1.061405429)
    p = 0.3275911
    s = jnp.where(x < 0.0, -1.0, 1.0)
    ax = jnp.abs(x)
    t = pl.reciprocal(1.0 + p * ax, approx=True)       # EUP, frees VALU slots
    poly = ((((a5 * t + a4) * t + a3) * t + a2) * t + a1) * t
    return s * (1.0 - poly * jnp.exp(-ax * ax))


def _gelu_exact(x):
    # matches torch.nn.GELU() (erf formulation)
    return 0.5 * x * (1.0 + _erf_approx(x * (1.0 / math.sqrt(2.0))))


def _layernorm_channels(y, gamma, beta):
    # LayerNorm2d: normalize over channel axis.  Here channels are axis 0
    # (sublanes), positions axis 1 (lanes).  eps = 1e-6, biased variance.
    u = jnp.mean(y, axis=0, keepdims=True)
    d = y - u
    v = jnp.mean(d * d, axis=0, keepdims=True)
    return d * jax.lax.rsqrt(v + 1e-6) * gamma + beta


# ----------------------------------------------------------------------------
# fused mask_downscaling kernel (one grid step per batch element)
# ----------------------------------------------------------------------------
def _mask_downscale_kernel(p_ref, w1_ref, b1_ref, g1_ref, be1_ref,
                           w2_ref, b2_ref, g2_ref, be2_ref,
                           w3_ref, b3_ref, o_ref):
    # p_ref : (K1=4, P1)  conv1 im2col patches, transposed; columns ordered
    #         ((ky2,kx2), h2, w2) so stage-2 patches are static lane slices.
    # w1    : (C1, 4)      w2 : (C2, 4*C1)  columns (ky2,kx2)-major, ci minor
    # w3    : (D, C2)      b*/g*/be* : (C, 1) column vectors
    # o_ref : (D, P2)      P2 = P1 // 4   (= He*We, raster order)
    K1, P1 = p_ref.shape
    C1 = w1_ref.shape[0]
    P2 = P1 // 4

    # ---- conv1 as broadcasted VPU FMAs (4x4 contraction: MXU not worth it) --
    p = p_ref[...]
    w1 = w1_ref[...]
    y1 = w1[:, 0:1] * p[0:1, :]
    for k in range(1, K1):
        y1 = y1 + w1[:, k:k + 1] * p[k:k + 1, :]
    y1 = y1 + b1_ref[...]
    y1 = _gelu_exact(_layernorm_channels(y1, g1_ref[...], be1_ref[...]))

    # ---- conv2 (2x2 s2): 4 shifted sub-images are static lane slices --------
    w2 = w2_ref[...]
    y2 = None
    for j in range(4):                                  # j = ky2*2 + kx2
        xj = y1[:, j * P2:(j + 1) * P2].astype(jnp.bfloat16)     # (C1, P2)
        wj = w2[:, j * C1:(j + 1) * C1].astype(jnp.bfloat16)     # (C2, C1)
        t = jnp.dot(wj, xj, preferred_element_type=jnp.float32)  # MXU, f32 acc
        y2 = t if y2 is None else y2 + t
    y2 = y2 + b2_ref[...]
    y2 = _gelu_exact(_layernorm_channels(y2, g2_ref[...], be2_ref[...]))

    # ---- conv3 (1x1) --------------------------------------------------------
    y3 = jnp.dot(w3_ref[...].astype(jnp.bfloat16), y2.astype(jnp.bfloat16),
                 preferred_element_type=jnp.float32) + b3_ref[...]
    o_ref[...] = y3                                     # lane-dense (D, P2)


def _mask_downscale(p1t, w1, b1, g1, be1, w2, b2, g2, be2, w3, b3):
    B, K1, P1 = p1t.shape
    C1 = w1.shape[0]
    C2 = w2.shape[0]
    D = w3.shape[0]
    P2 = P1 // 4

    flops = int(B * (2 * K1 * C1 * P1 + 2 * 4 * C2 * C1 * P2
                     + 2 * D * C2 * P2 + 12 * (C1 * P1 + C2 * P2)))
    transcendentals = int(B * (C1 * P1 + C2 * P2 + P1 + P2))
    bytes_accessed = int(4 * (B * K1 * P1 + B * D * P2 + C1 * K1
                              + C2 * 4 * C1 + D * C2 + 3 * C1 + 3 * C2 + D))

    return pl.pallas_call(
        _mask_downscale_kernel,
        out_shape=jax.ShapeDtypeStruct((B, D, P2), jnp.float32),
        grid=(B,),
        in_specs=[
            pl.BlockSpec((None, K1, P1), lambda i: (i, 0, 0)),
            pl.BlockSpec((C1, K1), lambda i: (0, 0)),
            pl.BlockSpec((C1, 1), lambda i: (0, 0)),
            pl.BlockSpec((C1, 1), lambda i: (0, 0)),
            pl.BlockSpec((C1, 1), lambda i: (0, 0)),
            pl.BlockSpec((C2, 4 * C1), lambda i: (0, 0)),
            pl.BlockSpec((C2, 1), lambda i: (0, 0)),
            pl.BlockSpec((C2, 1), lambda i: (0, 0)),
            pl.BlockSpec((C2, 1), lambda i: (0, 0)),
            pl.BlockSpec((D, C2), lambda i: (0, 0)),
            pl.BlockSpec((D, 1), lambda i: (0, 0)),
        ],
        out_specs=pl.BlockSpec((None, D, P2), lambda i: (i, 0, 0)),
        compiler_params=pltpu.CompilerParams(dimension_semantics=("parallel",)),
        cost_estimate=pl.CostEstimate(flops=flops,
                                      transcendentals=transcendentals,
                                      bytes_accessed=bytes_accessed),
    )(p1t, w1, b1, g1, be1, w2, b2, g2, be2, w3, b3)


# ----------------------------------------------------------------------------
# point-embedding kernel (single grid-less call over all B*Np points)
# ----------------------------------------------------------------------------
def _point_embed_kernel(c_ref, l_ref, g_ref, nap_ref, pe0_ref, pe1_ref, o_ref):
    # c_ref: (N, 2) coords normalized to [0,1]; l_ref: (N, 1) labels as float
    # g_ref: (2, D/2) gaussian matrix; nap/pe0/pe1: (1, D) embedding rows
    c = 2.0 * c_ref[...] - 1.0                         # (N, 2)
    g = g_ref[...]                                     # (2, D/2)
    proj = c[:, 0:1] * g[0:1, :] + c[:, 1:2] * g[1:2, :]   # pure VPU (K=2)
    proj = proj * (2.0 * math.pi)
    pe = jnp.concatenate([jnp.sin(proj), jnp.cos(proj)], axis=-1)   # (N, D)
    lab = l_ref[...]                                   # (N, 1)
    pe = jnp.where(lab == -1.0, 0.0, pe)
    pe = pe + jnp.where(lab == -1.0, nap_ref[...], 0.0)
    pe = pe + jnp.where(lab == 0.0, pe0_ref[...], 0.0)
    pe = pe + jnp.where(lab == 1.0, pe1_ref[...], 0.0)
    o_ref[...] = pe


def _point_embed(coords_norm, labels_col, gaussian, nap, pe0, pe1):
    Ntot = coords_norm.shape[0]
    half = gaussian.shape[1]
    D = 2 * half
    ce = pl.CostEstimate(
        flops=int(Ntot * (4 * half + 10 * D + 16)),
        transcendentals=int(Ntot * D),
        bytes_accessed=int(4 * (3 * Ntot + 2 * half + 3 * D + Ntot * D)))
    return pl.pallas_call(
        _point_embed_kernel,
        out_shape=jax.ShapeDtypeStruct((Ntot, D), jnp.float32),
        cost_estimate=ce,
    )(coords_norm, labels_col, gaussian, nap, pe0, pe1)


# ----------------------------------------------------------------------------
# PromptEncoder
# ----------------------------------------------------------------------------
class PromptEncoderPallas:
    def __init__(self, embed_dim, image_embedding_size, input_image_size,
                 mask_in_chans, key):
        self.embed_dim = embed_dim
        self.image_embedding_size = image_embedding_size
        self.input_image_size = input_image_size
        self.mask_in_chans = mask_in_chans
        c1 = mask_in_chans // 4

        ks = jax.random.split(key, 16)
        half = embed_dim // 2
        # PositionEmbeddingRandom buffer (scale=1.0)
        self.pe_gaussian = jax.random.normal(ks[0], (2, half), jnp.float32)
        # embedding tables, each nn.Embedding(1, embed_dim) -> (1, D)
        self.point_emb = [jax.random.normal(ks[1 + i], (1, embed_dim),
                                            jnp.float32) for i in range(6)]
        self.not_a_point = jax.random.normal(ks[7], (1, embed_dim), jnp.float32)
        self.not_a_doodle = jax.random.normal(ks[8], (1, embed_dim), jnp.float32)
        self.no_mask = jax.random.normal(ks[9], (1, embed_dim), jnp.float32)

        # mask_downscaling params, stored in "transposed" (Cout, K) layout.
        # Loading from torch:  conv1  w.reshape(C1, 4)
        #                      conv2  w.permute(0, 2, 3, 1).reshape(C2, 4*C1)
        #                      conv3  w.reshape(D, C2)
        def conv_w(k, cout, cin, ksz):
            fan_in = cin * ksz * ksz
            w = jax.random.normal(k, (cout, cin * ksz * ksz), jnp.float32)
            return w / math.sqrt(fan_in)                 # (Cout, Cin*k*k)

        self.w1 = conv_w(ks[10], c1, 1, 2)               # (c1, 4)
        self.b1 = jnp.zeros((c1, 1), jnp.float32)
        self.ln1_g = jnp.ones((c1, 1), jnp.float32)
        self.ln1_b = jnp.zeros((c1, 1), jnp.float32)

        self.w2 = conv_w(ks[11], mask_in_chans, c1, 2)   # (mic, 4*c1)
        self.b2 = jnp.zeros((mask_in_chans, 1), jnp.float32)
        self.ln2_g = jnp.ones((mask_in_chans, 1), jnp.float32)
        self.ln2_b = jnp.zeros((mask_in_chans, 1), jnp.float32)

        self.w3 = conv_w(ks[12], embed_dim, mask_in_chans, 1)   # (D, mic)
        self.b3 = jnp.zeros((embed_dim, 1), jnp.float32)

    # ---- points ------------------------------------------------------------
    def _embed_points(self, coords, labels, pad):
        B = coords.shape[0]
        pts = coords + 0.5
        labs = labels.astype(jnp.float32)
        if pad:
            pts = jnp.concatenate(
                [pts, jnp.zeros((B, 1, 2), jnp.float32)], axis=1)
            labs = jnp.concatenate(
                [labs, -jnp.ones((B, 1), jnp.float32)], axis=1)
        H_in, W_in = self.input_image_size
        pts = pts / jnp.array([[[W_in, H_in]]], dtype=jnp.float32)
        Np = pts.shape[1]
        pe = _point_embed(pts.reshape(B * Np, 2), labs.reshape(B * Np, 1),
                          self.pe_gaussian, self.not_a_point,
                          self.point_emb[0], self.point_emb[1])
        pe = pe.reshape(B, Np, self.embed_dim)
        # Reference module only uses the first two point embeddings.
        return pe[:, 0, :], pe[:, 1, :]

    # ---- masks -------------------------------------------------------------
    def _embed_masks(self, masks_nchw):
        B = masks_nchw.shape[0]
        He, We = self.image_embedding_size                # mask input = 4He x 4We
        # Build the conv1 im2col patches (transposed, (B, K1=4, P1=4*He*We))
        # with stage-1 positions ordered ((ky2,kx2), h2, w2) so the in-kernel
        # stride-2 re-patchify for conv2 is just static lane slices.
        x = masks_nchw[:, 0]                              # (B, 4He, 4We)
        x = x.reshape(B, He, 2, 2, We, 2, 2)              # (B,h2,ky2,ky1,w2,kx2,kx1)
        p1t = x.transpose(0, 3, 6, 2, 5, 1, 4).reshape(B, 4, 4 * He * We)
        out = _mask_downscale(p1t, self.w1, self.b1, self.ln1_g, self.ln1_b,
                              self.w2, self.b2, self.ln2_g, self.ln2_b,
                              self.w3, self.b3)           # (B, D, He*We)
        dense = out.reshape(B, self.embed_dim, He, We)    # free reshape -> NCHW
        return dense, dense

    # ---- forward -----------------------------------------------------------
    def __call__(self, points, boxes, doodles, masks):
        assert points is not None and masks is not None
        # TODO(synk): boxes / doodles branches not implemented (torch reference
        # code for those branches is shape-inconsistent).
        coords, labels = points
        sp1, sp2 = self._embed_points(coords, labels, pad=(boxes is None))
        sparse_embeddings = jnp.concatenate(
            [sp1[:, None, :], sp2[:, None, :]], axis=1)   # (B, 2, D) as in torch
        p1, p2 = self._embed_masks(masks)
        dense_embeddings = p1
        return p1, p2, sparse_embeddings, dense_embeddings


# ----------------------------------------------------------------------------
if __name__ == "__main__":
    key = jax.random.PRNGKey(0)
    k_par, k_c, k_l, k_m = jax.random.split(key, 4)

    B = 2
    embed_dim = 32
    image_embedding_size = (8, 8)
    input_image_size = (32, 32)
    mask_in_chans = 16
    n_points = 3

    enc = PromptEncoderPallas(embed_dim, image_embedding_size,
                              input_image_size, mask_in_chans, k_par)

    coords = jax.random.uniform(k_c, (B, n_points, 2), jnp.float32,
                                0.0, float(input_image_size[1]))
    labels = jax.random.randint(k_l, (B, n_points), 0, 2).astype(jnp.float32)
    masks = jax.random.normal(
        k_m, (B, 1, 4 * image_embedding_size[0], 4 * image_embedding_size[1]),
        jnp.float32)

    p1, p2, sparse, dense = enc((coords, labels), None, None, masks)
    jax.block_until_ready((p1, p2, sparse, dense))

    assert p1.shape == (B, embed_dim, *image_embedding_size)
    assert p2.shape == (B, embed_dim, *image_embedding_size)
    assert sparse.shape == (B, 2, embed_dim)
    assert dense.shape == (B, embed_dim, *image_embedding_size)
    print("KERNEL_OK")
</pallas_src>

<mosaic_0001>
module attributes {stable_mosaic.version = 11 : i64} {
  func.func @_point_embed_kernel(%arg0: memref<8x2xf32, #tpu.memory_space<vmem>>, %arg1: memref<8x1xf32, #tpu.memory_space<vmem>>, %arg2: memref<2x16xf32, #tpu.memory_space<vmem>>, %arg3: memref<1x32xf32, #tpu.memory_space<vmem>>, %arg4: memref<1x32xf32, #tpu.memory_space<vmem>>, %arg5: memref<1x32xf32, #tpu.memory_space<vmem>>, %arg6: memref<8x32xf32, #tpu.memory_space<vmem>>) attributes {dimension_semantics = [], scalar_prefetch = 0 : i64, scratch_operands = 0 : i64, tpu.core_type = #tpu.core_type<tc>} {
    %c0 = arith.constant 0 : index
    %c0_0 = arith.constant 0 : index
    %0 = vector.load %arg0[%c0, %c0_0] : memref<8x2xf32, #tpu.memory_space<vmem>>, vector<8x2xf32>
    %cst = arith.constant 2.000000e+00 : f32
    %1 = vector.broadcast %cst : f32 to vector<8x2xf32>
    %2 = arith.mulf %1, %0 : vector<8x2xf32>
    %cst_1 = arith.constant 1.000000e+00 : f32
    %3 = vector.broadcast %cst_1 : f32 to vector<8x2xf32>
    %4 = arith.subf %2, %3 : vector<8x2xf32>
    %c0_2 = arith.constant 0 : index
    %c0_3 = arith.constant 0 : index
    %5 = vector.load %arg2[%c0_2, %c0_3] : memref<2x16xf32, #tpu.memory_space<vmem>>, vector<2x16xf32>
    %6 = vector.extract_strided_slice %4 {offsets = [0, 0], sizes = [8, 1], strides = [1, 1]} : vector<8x2xf32> to vector<8x1xf32>
    %7 = vector.extract_strided_slice %5 {offsets = [0, 0], sizes = [1, 16], strides = [1, 1]} : vector<2x16xf32> to vector<1x16xf32>
    %8 = vector.broadcast %6 : vector<8x1xf32> to vector<8x16xf32>
    %9 = vector.broadcast %7 : vector<1x16xf32> to vector<8x16xf32>
    %10 = arith.mulf %8, %9 : vector<8x16xf32>
    %11 = vector.extract_strided_slice %4 {offsets = [0, 1], sizes = [8, 1], strides = [1, 1]} : vector<8x2xf32> to vector<8x1xf32>
    %12 = vector.extract_strided_slice %5 {offsets = [1, 0], sizes = [1, 16], strides = [1, 1]} : vector<2x16xf32> to vector<1x16xf32>
    %13 = vector.broadcast %11 : vector<8x1xf32> to vector<8x16xf32>
    %14 = vector.broadcast %12 : vector<1x16xf32> to vector<8x16xf32>
    %15 = arith.mulf %13, %14 : vector<8x16xf32>
    %16 = arith.addf %10, %15 : vector<8x16xf32>
    %cst_4 = arith.constant 6.28318548 : f32
    %17 = vector.broadcast %cst_4 : f32 to vector<8x16xf32>
    %18 = arith.mulf %16, %17 : vector<8x16xf32>
    %19 = math.sin %18 : vector<8x16xf32>
    %20 = math.cos %18 : vector<8x16xf32>
    %21 = tpu.concatenate %19, %20 in 1 : vector<8x16xf32>, vector<8x16xf32> -> vector<8x32xf32>
    %c0_5 = arith.constant 0 : index
    %c0_6 = arith.constant 0 : index
    %22 = vector.load %arg1[%c0_5, %c0_6] : memref<8x1xf32, #tpu.memory_space<vmem>>, vector<8x1xf32>
    %cst_7 = arith.constant -1.000000e+00 : f32
    %23 = vector.broadcast %cst_7 : f32 to vector<8x1xf32>
    %24 = arith.cmpf oeq, %22, %23 : vector<8x1xf32>
    %cst_8 = arith.constant 0.000000e+00 : f32
    %25 = vector.shape_cast %24 : vector<8x1xi1> to vector<8x1xi1>
    %26 = vector.broadcast %25 : vector<8x1xi1> to vector<8x32xi1>
    %27 = vector.broadcast %cst_8 : f32 to vector<8x32xf32>
    %28 = arith.select %26, %27, %21 : vector<8x32xi1>, vector<8x32xf32>
    %cst_9 = arith.constant -1.000000e+00 : f32
    %29 = vector.broadcast %cst_9 : f32 to vector<8x1xf32>
    %30 = arith.cmpf oeq, %22, %29 : vector<8x1xf32>
    %c0_10 = arith.constant 0 : index
    %c0_11 = arith.constant 0 : index
    %31 = vector.load %arg3[%c0_10, %c0_11] : memref<1x32xf32, #tpu.memory_space<vmem>>, vector<1x32xf32>
    %cst_12 = arith.constant 0.000000e+00 : f32
    %32 = vector.shape_cast %30 : vector<8x1xi1> to vector<8x1xi1>
    %33 = vector.broadcast %32 : vector<8x1xi1> to vector<8x32xi1>
    %34 = vector.shape_cast %31 : vector<1x32xf32> to vector<1x32xf32>
    %35 = vector.broadcast %34 : vector<1x32xf32> to vector<8x32xf32>
    %36 = vector.broadcast %cst_12 : f32 to vector<8x32xf32>
    %37 = arith.select %33, %35, %36 : vector<8x32xi1>, vector<8x32xf32>
    %38 = arith.addf %28, %37 : vector<8x32xf32>
    %cst_13 = arith.constant 0.000000e+00 : f32
    %39 = vector.broadcast %cst_13 : f32 to vector<8x1xf32>
    %40 = arith.cmpf oeq, %22, %39 : vector<8x1xf32>
    %c0_14 = arith.constant 0 : index
    %c0_15 = arith.constant 0 : index
    %41 = vector.load %arg4[%c0_14, %c0_15] : memref<1x32xf32, #tpu.memory_space<vmem>>, vector<1x32xf32>
    %cst_16 = arith.constant 0.000000e+00 : f32
    %42 = vector.shape_cast %40 : vector<8x1xi1> to vector<8x1xi1>
    %43 = vector.broadcast %42 : vector<8x1xi1> to vector<8x32xi1>
    %44 = vector.shape_cast %41 : vector<1x32xf32> to vector<1x32xf32>
    %45 = vector.broadcast %44 : vector<1x32xf32> to vector<8x32xf32>
    %46 = vector.broadcast %cst_16 : f32 to vector<8x32xf32>
    %47 = arith.select %43, %45, %46 : vector<8x32xi1>, vector<8x32xf32>
    %48 = arith.addf %38, %47 : vector<8x32xf32>
    %cst_17 = arith.constant 1.000000e+00 : f32
    %49 = vector.broadcast %cst_17 : f32 to vector<8x1xf32>
    %50 = arith.cmpf oeq, %22, %49 : vector<8x1xf32>
    %c0_18 = arith.constant 0 : index
    %c0_19 = arith.constant 0 : index
    %51 = vector.load %arg5[%c0_18, %c0_19] : memref<1x32xf32, #tpu.memory_space<vmem>>, vector<1x32xf32>
    %cst_20 = arith.constant 0.000000e+00 : f32
    %52 = vector.shape_cast %50 : vector<8x1xi1> to vector<8x1xi1>
    %53 = vector.broadcast %52 : vector<8x1xi1> to vector<8x32xi1>
    %54 = vector.shape_cast %51 : vector<1x32xf32> to vector<1x32xf32>
    %55 = vector.broadcast %54 : vector<1x32xf32> to vector<8x32xf32>
    %56 = vector.broadcast %cst_20 : f32 to vector<8x32xf32>
    %57 = arith.select %53, %55, %56 : vector<8x32xi1>, vector<8x32xf32>
    %58 = arith.addf %48, %57 : vector<8x32xf32>
    %c0_21 = arith.constant 0 : index
    %c0_22 = arith.constant 0 : index
    %59 = vector.load %arg6[%c0_21, %c0_22] : memref<8x32xf32, #tpu.memory_space<vmem>>, vector<8x32xf32>
    tpu.vector_store %arg6[%c0_21, %c0_22], %58 {strides = array<i32>} : memref<8x32xf32, #tpu.memory_space<vmem>>, vector<8x32xf32>,
    return
  }
}

</mosaic_0001>

<bundles_post_ra>
// kernel: tpu_custom_call.1
= control target key start
LH: loop header
LB: loop body
LE: loop exit
PB: predicated region body
PF: predicated region fallthrough
CT: control target
= control target key end

     0   :  { %v381_v1 = vmov 0   ;;  %s468_s0 = inlined_call_operand.vmem [shape: f32[8,2], index: 0, kind: input, shape index: {}]   ;;  %s469_s1 = inlined_call_operand.vmem [shape: f32[8,1], index: 1, kind: input, shape index: {}]   ;;  %s470_s2 = inlined_call_operand.vmem [shape: f32[2,16], index: 2, kind: input, shape index: {}]   ;;  %s471_s3 = inlined_call_operand.vmem [shape: f32[1,32], index: 3, kind: input, shape index: {}]   ;;  %s472_s4 = inlined_call_operand.vmem [shape: f32[1,32], index: 4, kind: input, shape index: {}]   ;;  %s473_s5 = inlined_call_operand.vmem [shape: f32[1,32], index: 5, kind: input, shape index: {}]   ;;  %s474_s6 = inlined_call_operand.hbm [shape: f32[8,32], index: 6, kind: output, shape index: {}]  }
   0x1   :  { %v24_v0 = vld [vmem:[%s468_s0] sm:$0xff]  ;;  %351 = vset.pattern.permute.xlu0 %v381_v1  ;;  %353 = vset.pattern.permute.xlu1 %v381_v1 }
   0x2   :  { %v25_v2 = vmul.f32 2.0, %v24_v0 }
   0x3   :  { %11 = vsyncpa [#allocation3], 0  ;;  %v382_v4 = vmov 1   ;;  %v262_v5 = vld [vmem:[%s469_s1] sm:$0xff]  ;;  %v33_v9 = vlaneseq  ;;  %v383_v33 = vmov 2102212464  }
   0x4   :  { %v325_v3 = vadd.f32 -1.0, %v25_v2  ;;  %vm263_vm0 = vcmp.eq.f32.partialorder %v262_v5, -1.0  ;;  %vm279_vm1 = vcmp.eq.f32.partialorder %v262_v5, 0.0  ;;  %vm294_vm2 = vcmp.eq.f32.partialorder %v262_v5, 1.0  ;;  %v27_v13 = vld [vmem:[%s470_s2] sm:$0x3] }
   0x5   :  { %v264_v6 = vsel %vm263_vm0, 1, %v381_v1  ;;  %v281_v7 = vsel %vm279_vm1, 1, %v381_v1  ;;  %v296_v8 = vsel %vm294_vm2, 1, %v381_v1  ;;  %v34_v10 = vshrl.u32 %v33_v9, 7  ;;  %s389_s1 = smov 16   ;;  %s390_s7 = smov [#allocation2]  }
   0x6   :  { %30 = vperm.xlu0 %351, %v325_v3   ;;  %266 = vperm.xlu1 %353, %v264_v6   ;;  %v384_v35 = vmov 920167782   ;;  %v385_v39 = vmov 1326507024   ;;  %v386_v41 = vmov 683565275  }
   0x7   :  { %v35_v11 = vsub.s32 0, %v34_v10  ;;  %v44_v12 = vsub.s32 1, %v34_v10  ;;  %v387_v43 = vmov 2475754826   ;;  %v388_v46 = vmov 2131351028  }
   0x9   :  { %v36_v15 = vrot.slane %v27_v13, %v35_v11  ;;  %v45_v16 = vrot.slane %v27_v13, %v44_v12 }
   0xa   :  { %352 = vset.pattern.permute.xlu0 %v382_v4  ;;  %283 = vperm.xlu1 %353, %v281_v7  }
   0xb   :  { %39 = vperm.xlu0 %352, %v325_v3  }
   0xe   :  { %298 = vperm.xlu1 %353, %v296_v8  }
   0xf   :  { %354 = vset.pattern.permute.xlu0 %v381_v1 }
  0x81   :  { %v31_v14 = vpop.permute.xlu0 %30 }
  0x82   :  { %v37_v18 = vmul.f32 %v36_v15, %v31_v14 }
  0x86   :  { %v40_v17 = vpop.permute.xlu0 %39 }
  0x87   :  { %v46_v19 = vmul.f32 %v45_v16, %v40_v17 }
  0x89   :  { %v47_v20 = vadd.f32 %v46_v19, %v37_v18 }
  0x8b   :  { %v435_v21 = vmul.f32 6.2831855, %v47_v20 }
  0x8d   :  { %v52_v22 = vand.u32 2139095040, %v435_v21  ;;  %v49_v23 = vand.u32 2147483647, %v435_v21  ;;  %vm51_vm10 = vcmp.lt.s32.totalorder %v435_v21, 0  ;;  %vm141_vm2 = vweird.f32 %v435_v21 }
  0x8f   :  { %v53_v24 = vshrl.u32 %v52_v22, 23  ;;  %v56_v26 = vand.u32 8388607, %v49_v23  ;;  %vm50_vm11 = vcmp.le.f32.partialorder %v49_v23, 0.7853982 }
  0x91   :  { %v326_v25 = vadd.s32 4294967169, %v53_v24  ;;  %v57_v29 = vor.u32 8388608, %v56_v26 }
  0x93   :  { %v59_v27 = vadd.s32 1, %v326_v25  ;;  %v97_v37 = vshll.u32 %v57_v29, 8 }
  0x95   :  { %vm60_vm3 = vcmp.gt.s32.totalorder %v59_v27, 0 }
  0x96   :  { %v61_v28 = vsel %vm60_vm3, %v59_v27, 0  ;;  %vm260_vm3 = vcmask 130048  }
  0x97   :  { %v63_v30 = vand.u32 31, %v61_v28  ;;  %v62_v31 = vshrl.u32 %v61_v28, 5 }
  0x99   :  { %v64_v32 = vsub.s32 32, %v63_v30  ;;  %v75_v34 = vshll.u32 %v383_v33, %v63_v30  ;;  %v78_v36 = vshll.u32 %v384_v35, %v63_v30  ;;  %v66_v42 = vshll.u32 %v386_v41, %v63_v30 }
  0x9a   :  { %v69_v45 = vshll.u32 %v387_v43, %v63_v30  ;;  %v72_v48 = vshll.u32 %v388_v46, %v63_v30  ;;  %vm84_vm4 = vcmp.lt.s32.totalorder %v62_v31, 4  ;;  %vm81_vm5 = vcmp.lt.s32.totalorder %v62_v31, 1 }
  0x9b   :  { %v76_v38 = vshrl.u32 %v384_v35, %v64_v32  ;;  %v79_v40 = vshrl.u32 %v385_v39, %v64_v32  ;;  %v67_v44 = vshrl.u32 %v387_v43, %v64_v32  ;;  %v70_v47 = vshrl.u32 %v388_v46, %v64_v32 }
  0x9c   :  { %v73_v49 = vshrl.u32 %v383_v33, %v64_v32  ;;  %v65_v53 = vshrl.u32 %v386_v41, %v64_v32  ;;  %vm82_vm6 = vcmp.lt.s32.totalorder %v62_v31, 2  ;;  %vm83_vm7 = vcmp.lt.s32.totalorder %v62_v31, 3 }
  0x9d   :  { %v77_v50 = vor.u32 %v76_v38, %v75_v34  ;;  %v80_v51 = vor.u32 %v79_v40, %v78_v36  ;;  %v68_v52 = vor.u32 %v67_v44, %v66_v42  ;;  %v71_v54 = vor.u32 %v70_v47, %v69_v45 }
  0x9e   :  { %v74_v55 = vor.u32 %v73_v49, %v72_v48 }
  0x9f   :  { %v90_v56 = vsel %vm84_vm4, %v77_v50, 920167782  ;;  %v94_v57 = vsel %vm84_vm4, %v80_v51, 1326507024  ;;  %v89_v59 = vsel %vm81_vm5, %v68_v52, %v71_v54  ;;  %v85_v62 = vsel %vm81_vm5, %v65_v53, %v68_v52 }
  0xa0   :  { %v86_v58 = vsel %vm84_vm4, %v74_v55, 2102212464  ;;  %v91_v60 = vsel %vm83_vm7, %v74_v55, %v90_v56  ;;  %v93_v61 = vsel %vm81_vm5, %v71_v54, %v74_v55  ;;  %v95_v1 = vsel %vm83_vm7, %v77_v50, %v94_v57  ;;  %v267_v55 = vpop.permute.xlu1 %266  ;;  %v334_v57 = vld [vmem:[%s471_s3] ss:$0 sm:$0xff]  ;;  %s317_s3 = sshll.u32 %s390_s7, 4  ;;  %s318_s3 = int_to_ptr.vmem [resolvable:$true] %s317_s3 }
  0xa1   :  { %v87_v63 = vsel %vm83_vm7, %v71_v54, %v86_v58  ;;  %v92_v0 = vsel %vm82_vm6, %v89_v59, %v91_v60  ;;  %v96_v2 = vsel %vm82_vm6, %v93_v61, %v95_v1  ;;  %vm268_vm4 = vcmp.eq.s32.totalorder %v267_v55, 1  ;;  %p364_p1 = scmp.lt.s32.totalorder %s318_s3, %s318_s3 }
  0xa2   :  { %v441_v3 = vmul.u32.u64.low %v97_v37, %v92_v0  ;;  %v442_v4 = vmul.u32.u64.high %v97_v37, %v92_v0, %v441_v3  ;;  %v444_v5 = vmul.u32.u64.low %v97_v37, %v96_v2  ;;  %v445_v6 = vmul.u32.u64.high %v97_v37, %v96_v2, %v444_v5 }
  0xa3   :  { %v88_v7 = vsel %vm82_vm6, %v85_v62, %v87_v63  ;;  %v277_v61 = vsel %vm268_vm4, %v334_v57, 0.0  ;;  %v336_v63 = vld [vmem:[%s473_s5] ss:$0 sm:$0xff]  ;;  %vm309_vm7 = vcmask 261120  }
  0xa4   :  { %v107_v8 = vadd.s32 1, %v442_v4  ;;  %v104_v9 = vmul.u32 %v97_v37, %v88_v7  ;;  %vm106_vm8 = vc.u32 %v445_v6, %v441_v3  ;;  %v105_v22 = vadd.s32 %v441_v3, %v445_v6  ;;  %v284_v56 = vpop.permute.xlu1 %283 }
  0xa5   :  { %vm285_vm5 = vcmp.eq.s32.totalorder %v284_v56, 1 }
  0xa6   :  { %v108_v10 = vsel %vm106_vm8, %v107_v8, %v442_v4 }
  0xa7   :  { %v109_v11 = vadd.s32 %v108_v10, %v104_v9 }
  0xa8   :  { %v299_v58 = vpop.permute.xlu1 %298 }
  0xa9   :  { %v110_v12 = vadd.s32 536870912, %v109_v11  ;;  %vm300_vm6 = vcmp.eq.s32.totalorder %v299_v58, 1 }
  0xaa   :  { %v307_v3 = vsel %vm300_vm6, %v336_v63, 0.0 }
  0xab   :  { %v111_v13 = vshrl.u32 %v110_v12, 30 }
  0xad   :  { %v112_v14 = vshll.u32 %v111_v13, 30  ;;  %v135_v36 = vsub.s32 4, %v111_v13 }
  0xaf   :  { %v113_v15 = vsub.s32 %v109_v11, %v112_v14  ;;  %v136_v39 = vsel %vm51_vm10, %v135_v36, %v111_v13 }
  0xb0   :  { %v138_v40 = vsel %vm50_vm11, 0, %v136_v39 }
  0xb1   :  { %v115_v16 = vsub.s32 0, %v113_v15  ;;  %v142_v41 = vadd.s32 3, %v138_v40  ;;  %v246_v43 = vand.u32 3, %v138_v40 }
  0xb3   :  { %v327_v17 = vmin.u32 %v115_v16, %v113_v15  ;;  %v143_v42 = vand.u32 3, %v142_v41  ;;  %vm251_vm13 = vcmp.eq.s32.totalorder %v246_v43, 2  ;;  %vm248_vm15 = vcmp.eq.s32.totalorder %v246_v43, 0 }
  0xb4   :  { %vm247_vm1 = vcmp.lt.s32.totalorder %v246_v43, 2 }
  0xb5   :  { %v117_v18 = vclz %v327_v17  ;;  %vm148_vm12 = vcmp.eq.s32.totalorder %v143_v42, 2  ;;  %vm145_vm14 = vcmp.eq.s32.totalorder %v143_v42, 0  ;;  %vm144_vm0 = vcmp.lt.s32.totalorder %v143_v42, 2 }
  0xb7   :  { %v328_v19 = vadd.s32 4294967294, %v117_v18 }
  0xb9   :  { %vm329_vm9 = vcmp.lt.s32.totalorder %v328_v19, 0 }
  0xba   :  { %v120_v20 = vsel %vm329_vm9, 0, %v328_v19 }
  0xbb   :  { %v121_v24 = vsub.s32 32, %v120_v20  ;;  %v125_v25 = vsub.s32 4294967266, %v120_v20  ;;  %v122_v26 = vshll.u32 %v113_v15, %v120_v20 }
  0xbd   :  { %v123_v27 = vshrl.u32 %v105_v22, %v121_v24  ;;  %v126_v28 = vadd.s32 127, %v125_v25 }
  0xbf   :  { %v124_v29 = vor.u32 %v123_v27, %v122_v26  ;;  %v127_v30 = vshll.u32 %v126_v28, 23 }
  0xc1   :  { %v128_v31 = vor.u32 4788187, %v127_v30  ;;  %v131_v33 = vcvt.s32.f32 %v124_v29 }
  0xc3   :  { %v129_v32 = vand.u32 2147483647, %v128_v31 }
  0xc5   :  { %v132_v34 = vmul.f32 %v131_v33, %v129_v32 }
  0xc7   :  { %v133_v35 = vxor.u32 2147483648, %v132_v34 }
  0xc9   :  { %v134_v37 = vsel %vm51_vm10, %v133_v35, %v132_v34 }
  0xca   :  { %v137_v38 = vsel %vm50_vm11, %v435_v21, %v134_v37  ;;  %v335_v21 = vld [vmem:[%s472_s4] ss:$0 sm:$0xff]  ;;  %s359_s4 = scalar_lea.vmem %s318_s3, 128 }
  0xcb   :  { %355 = vcosq.f32 %v137_v38  ;;  %v292_v1 = vsel %vm285_vm5, %v335_v21, 0.0  ;;  %p360_p0 = scmp.ne.s32.totalorder %s318_s3, %s359_s4  ;;  %p365_p2 = scmp.lt.s32.totalorder %s359_s4, %s359_s4 }
  0xcc   :  { %357 = vsinq.f32 %v137_v38 }
  0xcd   :  { %p366_p3 = por %p365_p2, %p364_p1 }
  0xcf   :  { %p367_p4 = pnand %p366_p3, %p360_p0 }
  0xd8   :  { %v356_v44 = vpop.eup %355 }
  0xd9   :  { %v358_v45 = vpop.eup %357  ;;  %v149_v46 = vxor.u32 2147483648, %v356_v44 }
  0xda   :  { %v146_v47 = vxor.u32 2147483648, %v358_v45 }
  0xdb   :  { %v253_v48 = vsel %vm251_vm13, %v149_v46, %v358_v45  ;;  %v150_v23 = vsel %vm148_vm12, %v149_v46, %v358_v45 }
  0xdc   :  { %v250_v49 = vsel %vm248_vm15, %v356_v44, %v146_v47  ;;  %v147_v50 = vsel %vm145_vm14, %v356_v44, %v146_v47 }
  0xdd   :  { %v254_v51 = vsel %vm247_vm1, %v250_v49, %v253_v48  ;;  %v151_v52 = vsel %vm144_vm0, %v147_v50, %v150_v23 }
  0xde   :  { %v255_v53 = vsel %vm141_vm2, nan, %v254_v51  ;;  %v152_v54 = vsel %vm141_vm2, nan, %v151_v52 }
  0xdf   :  { %257 = vrot.lane.b32.xlu0 %v255_v53, %s389_s1 }
 0x151   :  { %v258_v59 = vpop.permute.xlu0 %257 }
 0x152   :  { %v261_v60 = vsel %vm260_vm3, %v152_v54, %v258_v59 }
 0x153   :  { %v269_v62 = vsel %vm268_vm4, 0.0, %v261_v60 }
 0x154   :  { %v278_v0 = vadd.f32 %v277_v61, %v269_v62 }
 0x156   :  { %v293_v2 = vadd.f32 %v292_v1, %v278_v0 }
 0x158   :  { %v308_v4 = vadd.f32 %v307_v3, %v293_v2 }
 0x15a   :  { %310 = vst.msk [vmem:[#allocation2] sm:$0xff] %vm309_vm7, %v308_v4 }
 0x15b   :  { %370 = shalt.err (!%p367_p4)
}
 0x15c   :  { %320 = dma.vmem_to_hbm [thread:$0]  %s318_s3, 128, %s474_s6, [#allocation3]  }
 0x15d   :  { %379 = dma.done.wait [#allocation3], 128  }
 0x15e   :  { %380 = vsyncadd [#allocation3], 4294967168 }
 0x15f   :  { %324 = vsyncpa [#allocation3], 1 }

</bundles_post_ra>
